<compile_context>
chip_gen: v5e
topology: v5e:2x2
jax: 0.10.0
libtpu: 0.0.40
codegen_flags: <defaults>
</compile_context>

<pallas_src>
import functools

import jax
import jax.numpy as jnp
from jax.experimental import pallas as pl
from jax.experimental.pallas import tpu as pltpu

LANES = 128
SUBLANES = 8
TILE_ROWS = 1024  # rows of 128 lanes per grid step; multiple of 8


def _bce_blur_kernel(n_ref, pred_ref, true_ref, part_ref, *, alpha, tile_rows):
    """One grid step: BCE-with-logits * blur factor on a (tile_rows, 128) tile,
    reduced to an (8, 128) partial sum written to this step's output block."""
    i = pl.program_id(0)
    last = pl.num_programs(0) - 1
    inv_alpha = jnp.float32(1.0 / (alpha + 1e-4))

    def loss_tile(x, y):
        # Numerically stable BCE with logits: max(x,0) - x*y + log1p(exp(-|x|)).
        # exp(-|x|) is reused for the sigmoid to save one EUP op per element.
        e = jnp.exp(-jnp.abs(x))                            # EUP exp
        bce = jnp.maximum(x, 0.0) - x * y + jnp.log1p(e)    # EUP log
        r = 1.0 / (1.0 + e)                                 # EUP reciprocal
        p = jnp.where(x >= 0.0, r, e * r)                   # sigmoid(x)
        af = 1.0 - jnp.exp((p - y - 1.0) * inv_alpha)       # EUP exp
        return bce * af

    def emit(vals):
        # (tile_rows,128) -> (tile_rows//8, 8, 128) -> sum over vreg groups:
        # pure VPU adds into one (8,128) vector partial (no XLU on the hot path).
        part = vals.reshape(tile_rows // SUBLANES, SUBLANES, LANES).sum(axis=0)
        part_ref[...] = part[None]

    @pl.when(i < last)
    def _():
        x = pred_ref[...].astype(jnp.float32)
        y = true_ref[...].astype(jnp.float32)
        emit(loss_tile(x, y))

    @pl.when(i == last)
    def _():
        # Tail tile: mask elements past n (wrapper padding or partial-block
        # garbage) on the inputs BEFORE exp/log so no NaN/inf can leak in,
        # then zero their contribution.
        x = pred_ref[...].astype(jnp.float32)
        y = true_ref[...].astype(jnp.float32)
        n = n_ref[0]
        row = jax.lax.broadcasted_iota(jnp.int32, (tile_rows, LANES), 0)
        lane = jax.lax.broadcasted_iota(jnp.int32, (tile_rows, LANES), 1)
        gidx = (i * tile_rows + row) * LANES + lane
        m = gidx < n
        x = jnp.where(m, x, 0.0)
        y = jnp.where(m, y, 0.0)
        emit(jnp.where(m, loss_tile(x, y), 0.0))


def bce_blur_with_logits_loss(pred, true, alpha=0.05, tile_rows=TILE_ROWS):
    """Mean over all elements of BCE-with-logits(pred, true) * blur alpha-factor."""
    assert pred.shape == true.shape
    n = pred.size

    # Flatten row-major (free view); keep native dtype — the kernel upcasts.
    pred_flat = pred.reshape(-1)
    true_flat = true.reshape(-1)

    # Pad only to an (8,128)-aligned element count; skipped when already aligned.
    chunk = SUBLANES * LANES
    n_pad = (-n) % chunk
    if n_pad:
        pred_flat = jnp.pad(pred_flat, (0, n_pad))
        true_flat = jnp.pad(true_flat, (0, n_pad))

    rows = (n + n_pad) // LANES          # multiple of 8
    tr = min(tile_rows, rows)            # multiple of 8
    num_blocks = pl.cdiv(rows, tr)

    pred2d = pred_flat.reshape(rows, LANES)
    true2d = true_flat.reshape(rows, LANES)

    in_spec = pl.BlockSpec((tr, LANES), lambda i, n_ref: (i, 0))
    out_spec = pl.BlockSpec((1, SUBLANES, LANES), lambda i, n_ref: (i, 0, 0))

    partials = pl.pallas_call(
        functools.partial(_bce_blur_kernel, alpha=alpha, tile_rows=tr),
        out_shape=jax.ShapeDtypeStruct((num_blocks, SUBLANES, LANES), jnp.float32),
        grid_spec=pltpu.PrefetchScalarGridSpec(
            num_scalar_prefetch=1,
            grid=(num_blocks,),
            in_specs=[in_spec, in_spec],
            out_specs=out_spec,
        ),
        compiler_params=pltpu.CompilerParams(
            dimension_semantics=("parallel",),
        ),
    )(jnp.array([n], dtype=jnp.int32), pred2d, true2d)

    return (jnp.sum(partials) / jnp.float32(n)).astype(jnp.float32)


def _reference(pred, true, alpha=0.05):
    pred = pred.astype(jnp.float32)
    true = true.astype(jnp.float32)
    bce = jnp.maximum(pred, 0.0) - pred * true + jnp.log1p(jnp.exp(-jnp.abs(pred)))
    p = jax.nn.sigmoid(pred)
    dx = p - true
    af = 1.0 - jnp.exp((dx - 1.0) / (alpha + 1e-4))
    return jnp.mean(bce * af)


if __name__ == "__main__":
    key = jax.random.PRNGKey(0)
    k1, k2 = jax.random.split(key)

    # NCHW, small shapes: batch=2, channels=4, spatial=16x16
    pred = jax.random.normal(k1, (2, 4, 16, 16), dtype=jnp.float32)
    true = (jax.random.uniform(k2, (2, 4, 16, 16)) > 0.5).astype(jnp.float32)

    out = bce_blur_with_logits_loss(pred, true, alpha=0.05)
    out = jax.block_until_ready(out)

    ref = _reference(pred, true, alpha=0.05)
    assert jnp.allclose(out, ref, rtol=1e-5, atol=1e-6), (out, ref)
    print("KERNEL_OK")
</pallas_src>

<mosaic_0001>
module attributes {stable_mosaic.version = 11 : i64} {
  func.func @_bce_blur_kernel(%arg0: i32, %arg1: memref<1xi32, #tpu.memory_space<smem>>, %arg2: memref<16x128xf32, #tpu.memory_space<vmem>>, %arg3: memref<16x128xf32, #tpu.memory_space<vmem>>, %arg4: memref<1x8x128xf32, #tpu.memory_space<vmem>>) attributes {dimension_semantics = [#tpu.dimension_semantics<parallel>], iteration_bounds = array<i64: 1>, scalar_prefetch = 1 : i64, scratch_operands = 0 : i64, tpu.core_type = #tpu.core_type<tc>, window_params = [{transform_indices = @transform_0, window_bounds = array<i64: 16, 128>}, {transform_indices = @transform_1, window_bounds = array<i64: 16, 128>}, {transform_indices = @transform_2, window_bounds = array<i64: 1, 8, 128>}]} {
    %c0_i32 = arith.constant 0 : i32
    %0 = arith.cmpi slt, %arg0, %c0_i32 : i32
    %1 = arith.extui %0 : i1 to i32
    %cst = arith.constant 19.9600792 : f32
    %c0_i32_0 = arith.constant 0 : i32
    %2 = arith.cmpi ne, %1, %c0_i32_0 : i32
    scf.if %2 {
      %c0 = arith.constant 0 : index
      %c0_4 = arith.constant 0 : index
      %6 = vector.load %arg2[%c0, %c0_4] : memref<16x128xf32, #tpu.memory_space<vmem>>, vector<16x128xf32>
      %c0_5 = arith.constant 0 : index
      %c0_6 = arith.constant 0 : index
      %7 = vector.load %arg3[%c0_5, %c0_6] : memref<16x128xf32, #tpu.memory_space<vmem>>, vector<16x128xf32>
      %8 = math.absf %6 : vector<16x128xf32>
      %cst_7 = arith.constant 0.000000e+00 : f32
      %9 = vector.broadcast %cst_7 : f32 to vector<16x128xf32>
      %10 = arith.subf %9, %8 : vector<16x128xf32>
      %11 = math.exp %10 : vector<16x128xf32>
      %cst_8 = arith.constant 0.000000e+00 : f32
      %12 = vector.broadcast %cst_8 : f32 to vector<16x128xf32>
      %13 = arith.maximumf %6, %12 : vector<16x128xf32>
      %14 = arith.mulf %6, %7 : vector<16x128xf32>
      %15 = arith.subf %13, %14 : vector<16x128xf32>
      %16 = math.log1p %11 : vector<16x128xf32>
      %17 = arith.addf %15, %16 : vector<16x128xf32>
      %cst_9 = arith.constant 1.000000e+00 : f32
      %18 = vector.broadcast %cst_9 : f32 to vector<16x128xf32>
      %19 = arith.addf %18, %11 : vector<16x128xf32>
      %cst_10 = arith.constant 1.000000e+00 : f32
      %20 = vector.broadcast %cst_10 : f32 to vector<16x128xf32>
      %21 = arith.divf %20, %19 : vector<16x128xf32>
      %cst_11 = arith.constant 0.000000e+00 : f32
      %22 = vector.broadcast %cst_11 : f32 to vector<16x128xf32>
      %23 = arith.cmpf oge, %6, %22 : vector<16x128xf32>
      %24 = arith.mulf %11, %21 : vector<16x128xf32>
      %25 = arith.select %23, %21, %24 : vector<16x128xi1>, vector<16x128xf32>
      %26 = arith.subf %25, %7 : vector<16x128xf32>
      %cst_12 = arith.constant 1.000000e+00 : f32
      %27 = vector.broadcast %cst_12 : f32 to vector<16x128xf32>
      %28 = arith.subf %26, %27 : vector<16x128xf32>
      %29 = vector.broadcast %cst : f32 to vector<16x128xf32>
      %30 = arith.mulf %28, %29 : vector<16x128xf32>
      %31 = math.exp %30 : vector<16x128xf32>
      %cst_13 = arith.constant 1.000000e+00 : f32
      %32 = vector.broadcast %cst_13 : f32 to vector<16x128xf32>
      %33 = arith.subf %32, %31 : vector<16x128xf32>
      %34 = arith.mulf %17, %33 : vector<16x128xf32>
      %35 = vector.shape_cast %34 : vector<16x128xf32> to vector<2x8x128xf32>
      %cst_14 = arith.constant dense<0.000000e+00> : vector<8x128xf32>
      %36 = vector.multi_reduction <add>, %35, %cst_14 [0] : vector<2x8x128xf32> to vector<8x128xf32>
      %37 = vector.shape_cast %36 : vector<8x128xf32> to vector<1x8x128xf32>
      %c0_15 = arith.constant 0 : index
      %c0_16 = arith.constant 0 : index
      %c0_17 = arith.constant 0 : index
      %38 = vector.load %arg4[%c0_15, %c0_16, %c0_17] : memref<1x8x128xf32, #tpu.memory_space<vmem>>, vector<1x8x128xf32>
      tpu.vector_store %arg4[%c0_15, %c0_16, %c0_17], %37 {strides = array<i32>} : memref<1x8x128xf32, #tpu.memory_space<vmem>>, vector<1x8x128xf32>,
    } else {
    }
    %c0_i32_1 = arith.constant 0 : i32
    %3 = arith.cmpi eq, %arg0, %c0_i32_1 : i32
    %4 = arith.extui %3 : i1 to i32
    %cst_2 = arith.constant 19.9600792 : f32
    %c0_i32_3 = arith.constant 0 : i32
    %5 = arith.cmpi ne, %4, %c0_i32_3 : i32
    scf.if %5 {
      %c0 = arith.constant 0 : index
      %c0_4 = arith.constant 0 : index
      %6 = vector.load %arg2[%c0, %c0_4] : memref<16x128xf32, #tpu.memory_space<vmem>>, vector<16x128xf32>
      %c0_5 = arith.constant 0 : index
      %c0_6 = arith.constant 0 : index
      %7 = vector.load %arg3[%c0_5, %c0_6] : memref<16x128xf32, #tpu.memory_space<vmem>>, vector<16x128xf32>
      %c0_7 = arith.constant 0 : index
      %8 = memref.load %arg1[%c0_7] : memref<1xi32, #tpu.memory_space<smem>>
      %9 = tpu.iota {dimensions = array<i32: 0>} : vector<16x128xi32>
      %10 = tpu.iota {dimensions = array<i32: 1>} : vector<16x128xi32>
      %c16_i32 = arith.constant 16 : i32
      %11 = arith.muli %arg0, %c16_i32 : i32
      %12 = vector.broadcast %11 : i32 to vector<16x128xi32>
      %13 = arith.addi %12, %9 : vector<16x128xi32>
      %c128_i32 = arith.constant 128 : i32
      %14 = vector.broadcast %c128_i32 : i32 to vector<16x128xi32>
      %15 = arith.muli %13, %14 : vector<16x128xi32>
      %16 = arith.addi %15, %10 : vector<16x128xi32>
      %17 = vector.broadcast %8 : i32 to vector<16x128xi32>
      %18 = arith.cmpi slt, %16, %17 : vector<16x128xi32>
      %cst_8 = arith.constant 0.000000e+00 : f32
      %19 = vector.broadcast %cst_8 : f32 to vector<16x128xf32>
      %20 = arith.select %18, %6, %19 : vector<16x128xi1>, vector<16x128xf32>
      %cst_9 = arith.constant 0.000000e+00 : f32
      %21 = vector.broadcast %cst_9 : f32 to vector<16x128xf32>
      %22 = arith.select %18, %7, %21 : vector<16x128xi1>, vector<16x128xf32>
      %23 = math.absf %20 : vector<16x128xf32>
      %cst_10 = arith.constant 0.000000e+00 : f32
      %24 = vector.broadcast %cst_10 : f32 to vector<16x128xf32>
      %25 = arith.subf %24, %23 : vector<16x128xf32>
      %26 = math.exp %25 : vector<16x128xf32>
      %cst_11 = arith.constant 0.000000e+00 : f32
      %27 = vector.broadcast %cst_11 : f32 to vector<16x128xf32>
      %28 = arith.maximumf %20, %27 : vector<16x128xf32>
      %29 = arith.mulf %20, %22 : vector<16x128xf32>
      %30 = arith.subf %28, %29 : vector<16x128xf32>
      %31 = math.log1p %26 : vector<16x128xf32>
      %32 = arith.addf %30, %31 : vector<16x128xf32>
      %cst_12 = arith.constant 1.000000e+00 : f32
      %33 = vector.broadcast %cst_12 : f32 to vector<16x128xf32>
      %34 = arith.addf %33, %26 : vector<16x128xf32>
      %cst_13 = arith.constant 1.000000e+00 : f32
      %35 = vector.broadcast %cst_13 : f32 to vector<16x128xf32>
      %36 = arith.divf %35, %34 : vector<16x128xf32>
      %cst_14 = arith.constant 0.000000e+00 : f32
      %37 = vector.broadcast %cst_14 : f32 to vector<16x128xf32>
      %38 = arith.cmpf oge, %20, %37 : vector<16x128xf32>
      %39 = arith.mulf %26, %36 : vector<16x128xf32>
      %40 = arith.select %38, %36, %39 : vector<16x128xi1>, vector<16x128xf32>
      %41 = arith.subf %40, %22 : vector<16x128xf32>
      %cst_15 = arith.constant 1.000000e+00 : f32
      %42 = vector.broadcast %cst_15 : f32 to vector<16x128xf32>
      %43 = arith.subf %41, %42 : vector<16x128xf32>
      %44 = vector.broadcast %cst_2 : f32 to vector<16x128xf32>
      %45 = arith.mulf %43, %44 : vector<16x128xf32>
      %46 = math.exp %45 : vector<16x128xf32>
      %cst_16 = arith.constant 1.000000e+00 : f32
      %47 = vector.broadcast %cst_16 : f32 to vector<16x128xf32>
      %48 = arith.subf %47, %46 : vector<16x128xf32>
      %49 = arith.mulf %32, %48 : vector<16x128xf32>
      %cst_17 = arith.constant 0.000000e+00 : f32
      %50 = vector.broadcast %cst_17 : f32 to vector<16x128xf32>
      %51 = arith.select %18, %49, %50 : vector<16x128xi1>, vector<16x128xf32>
      %52 = vector.shape_cast %51 : vector<16x128xf32> to vector<2x8x128xf32>
      %cst_18 = arith.constant dense<0.000000e+00> : vector<8x128xf32>
      %53 = vector.multi_reduction <add>, %52, %cst_18 [0] : vector<2x8x128xf32> to vector<8x128xf32>
      %54 = vector.shape_cast %53 : vector<8x128xf32> to vector<1x8x128xf32>
      %c0_19 = arith.constant 0 : index
      %c0_20 = arith.constant 0 : index
      %c0_21 = arith.constant 0 : index
      %55 = vector.load %arg4[%c0_19, %c0_20, %c0_21] : memref<1x8x128xf32, #tpu.memory_space<vmem>>, vector<1x8x128xf32>
      tpu.vector_store %arg4[%c0_19, %c0_20, %c0_21], %54 {strides = array<i32>} : memref<1x8x128xf32, #tpu.memory_space<vmem>>, vector<1x8x128xf32>,
    } else {
    }
    return
  }
  func.func @transform_0(%arg0: i32, %arg1: memref<1xi32, #tpu.memory_space<smem>>) -> (i32, i32) {
    %c0_i32 = arith.constant 0 : i32
    %c0_i32_0 = arith.constant 0 : i32
    return %arg0, %c0_i32 : i32, i32
  }
  func.func @transform_1(%arg0: i32, %arg1: memref<1xi32, #tpu.memory_space<smem>>) -> (i32, i32) {
    %c0_i32 = arith.constant 0 : i32
    %c0_i32_0 = arith.constant 0 : i32
    return %arg0, %c0_i32 : i32, i32
  }
  func.func @transform_2(%arg0: i32, %arg1: memref<1xi32, #tpu.memory_space<smem>>) -> (i32, i32, i32) {
    %c0_i32 = arith.constant 0 : i32
    %c0_i32_0 = arith.constant 0 : i32
    %c0_i32_1 = arith.constant 0 : i32
    return %arg0, %c0_i32, %c0_i32_0 : i32, i32, i32
  }
}

</mosaic_0001>

<bundles_post_ra>
// kernel: tpu_custom_call.1
= control target key start
LH: loop header
LB: loop body
LE: loop exit
PB: predicated region body
PF: predicated region fallthrough
CT: control target
= control target key end

     0   :  { %9 = vsyncpa [#allocation5], 0  ;;  %s465_s0 = inlined_call_operand.<no memory space> [shape: s32[1], index: 0, kind: input, shape index: {}]   ;;  %s466_s1 = inlined_call_operand.hbm [shape: f32[16,128], index: 1, kind: input, shape index: {}]   ;;  %s467_s2 = inlined_call_operand.hbm [shape: f32[16,128], index: 2, kind: input, shape index: {}]   ;;  %s468_s3 = inlined_call_operand.hbm [shape: f32[1,8,128], index: 3, kind: output, shape index: {}]  }
   0x1   :  { %10 = vsyncpa [#allocation8], 0 }
   0x2   :  { %11 = vsyncpa [#allocation6], 0  ;;  %s16_s14 = sshll.u32 %s466_s1, 4  ;;  %s382_s15 = smov [#allocation4]   ;;  %s17_s14 = int_to_ptr.hbm [resolvable:$true] %s16_s14 }
   0x3   :  { %s18_s16 = sshll.u32 %s382_s15, 4  ;;  %s29_s19 = sshll.u32 %s467_s2, 4  ;;  %s19_s16 = int_to_ptr.vmem [resolvable:$true] %s18_s16  ;;  %s30_s19 = int_to_ptr.hbm [resolvable:$true] %s29_s19 }
   0x4   :  { %s383_s20 = smov 128   ;;  %s384_s21 = smov 8  }
   0x5   :  { %24 = dma.hbm_to_vmem [thread:$0]  %s17_s14, 256, %s19_s16, [#allocation5], %s383_s20, %s383_s20, %s384_s21  }
   0x6   :  { %s385_s22 = smov [#allocation7]  }
   0x7   :  { %s31_s23 = sshll.u32 %s385_s22, 4  ;;  %s32_s23 = int_to_ptr.vmem [resolvable:$true] %s31_s23 }
   0x8   :  { %37 = dma.hbm_to_vmem [thread:$0]  %s30_s19, 256, %s32_s23, [#allocation8], %s383_s20, %s383_s20, %s384_s21  }
   0x9   :  { %376 = dma.done.wait [#allocation5], 256  }
   0xa   :  { %377 = vsyncadd [#allocation5], 4294967040 }
   0xb   :  { %378 = dma.done.wait [#allocation8], 256  }
   0xc   :  { %379 = vsyncadd [#allocation8], 4294967040  ;;  %v151_v0 = vlaneseq  ;;  %v164_v5 = vstv %s465_s0  ;;  %v146_v8 = vld [vmem:[#allocation4] sm:$0xff]  ;;  %v147_v9 = vld [vmem:[#allocation4 + $0x8] sm:$0xff]  ;;  %s386_s0 = smov [#allocation9]   ;;  %s268_s27 = sshll.u32 %s468_s3, 4  ;;  %s269_s27 = int_to_ptr.hbm [resolvable:$true] %s268_s27 }
   0xd   :  { %v148_v39 = vld [vmem:[#allocation7] sm:$0xff]  ;;  %v149_v43 = vld [vmem:[#allocation7 + $0x8] sm:$0xff]  ;;  %s266_s2 = sshll.u32 %s386_s0, 4  ;;  %s267_s2 = int_to_ptr.vmem [resolvable:$true] %s266_s2 }
   0xe   :  { %v152_v1 = vshrl.u32 %v151_v0, 7  ;;  %v155_v2 = vand.u32 127, %v151_v0 }
  0x10   :  { %v153_v3 = vadd.s32 8, %v152_v1  ;;  %v160_v4 = vmul.u32 128, %v152_v1 }
  0x12   :  { %v161_v6 = vmul.u32 128, %v153_v3  ;;  %v162_v7 = vadd.s32 %v160_v4, %v155_v2 }
  0x14   :  { %v163_v10 = vadd.s32 %v161_v6, %v155_v2  ;;  %vm416_vm0 = vcmp.lt.s32.totalorder %v162_v7, %v164_v5 }
  0x15   :  { %v422_v12 = vsel %vm416_vm0, %v146_v8, 0.0  ;;  %v169_v45 = vsel %vm416_vm0, %v148_v39, 0.0 }
  0x16   :  { %vm424_vm1 = vcmp.lt.s32.totalorder %v163_v10, %v164_v5  ;;  %v171_v14 = vand.u32 2147483647, %v422_v12  ;;  %vm237_vm10 = vcmp.ge.f32.partialorder %v422_v12, 0.0  ;;  %v179_v1 = vmax.f32 %v422_v12, 0.0 }
  0x17   :  { %v431_v15 = vsel %vm424_vm1, %v147_v9, 0.0  ;;  %v170_v50 = vsel %vm424_vm1, %v149_v43, 0.0  ;;  %v181_v2 = vmul.f32 %v169_v45, %v422_v12 }
  0x18   :  { %v172_v16 = vand.u32 2147483647, %v431_v15  ;;  %v173_v17 = vsub.f32 0.0, %v171_v14  ;;  %vm238_vm11 = vcmp.ge.f32.partialorder %v431_v15, 0.0  ;;  %v180_v8 = vmax.f32 %v431_v15, 0.0 }
  0x19   :  { %v182_v9 = vmul.f32 %v170_v50, %v431_v15 }
  0x1a   :  { %v174_v18 = vsub.f32 0.0, %v172_v16  ;;  %v175_v19 = vmul.f32 1.442695, %v173_v17  ;;  %v183_v17 = vsub.f32 %v179_v1, %v181_v2 }
  0x1c   :  { %288 = vpow2.f32 %v175_v19  ;;  %v177_v20 = vmul.f32 1.442695, %v174_v18  ;;  %v184_v18 = vsub.f32 %v180_v8, %v182_v9 }
  0x1e   :  { %290 = vpow2.f32 %v177_v20 }
  0x22   :  { %v434_v21 = vpop.eup %288 }
  0x23   :  { %v185_v22 = vadd.f32 1.0, %v434_v21  ;;  %v188_v48 = vmul.f32 -0.5, %v434_v21  ;;  %v191_v60 = vand.u32 2147483647, %v434_v21 }
  0x24   :  { %v437_v23 = vpop.eup %290 }
  0x25   :  { %v194_v24 = vadd.f32 1.0, %v437_v23  ;;  %292 = vrcp.f32 %v185_v22  ;;  %vm212_vm2 = vweird.f32 %v185_v22  ;;  %v218_v28 = vand.u32 2147483648, %v185_v22 }
  0x26   :  { %v216_v30 = vand.u32 2147483647, %v185_v22  ;;  %v197_v53 = vmul.f32 -0.5, %v437_v23  ;;  %v189_v56 = vadd.f32 1.0, %v188_v48  ;;  %v200_v3 = vand.u32 2147483647, %v437_v23 }
  0x27   :  { %294 = vrcp.f32 %v194_v24  ;;  %vm227_vm4 = vweird.f32 %v194_v24  ;;  %v233_v32 = vand.u32 2147483648, %v194_v24  ;;  %v231_v35 = vand.u32 2147483647, %v194_v24 }
  0x28   :  { %v219_v36 = vor.u32 1.1754944e-38, %v218_v28  ;;  %vm217_vm7 = vcmp.eq.f32.partialorder %v216_v30, 8.507059e+37  ;;  %296 = vlog2.f32 %v185_v22  ;;  %v198_v61 = vadd.f32 1.0, %v197_v53 }
  0x29   :  { %v234_v40 = vor.u32 1.1754944e-38, %v233_v32  ;;  %vm232_vm9 = vcmp.eq.f32.partialorder %v231_v35, 8.507059e+37  ;;  %298 = vlog2.f32 %v194_v24  ;;  %v190_v5 = vmul.f32 %v434_v21, %v189_v56 }
  0x2a   :  { %vm192_vm12 = vcmp.lt.f32.partialorder %v191_v60, 0.0004427343  ;;  %v199_v14 = vmul.f32 %v437_v23, %v198_v61  ;;  %vm201_vm13 = vcmp.lt.f32.partialorder %v200_v3, 0.0004427343 }
  0x2b   :  { %v293_v25 = vpop.eup %292 }
  0x2c   :  { %v208_v26 = vmul.f32 %v293_v25, %v185_v22  ;;  %vm213_vm3 = vweird.f32 %v293_v25 }
  0x2d   :  { %v295_v27 = vpop.eup %294  ;;  %vm214_vm6 = vmor %vm212_vm2, %vm213_vm3 }
  0x2e   :  { %v209_v29 = vsub.f32 1.0, %v208_v26  ;;  %v223_v31 = vmul.f32 %v295_v27, %v194_v24  ;;  %vm228_vm5 = vweird.f32 %v295_v27  ;;  %v297_v59 = vpop.eup %296 }
  0x2f   :  { %vm229_vm8 = vmor %vm227_vm4, %vm228_vm5  ;;  %v299_v0 = vpop.eup %298  ;;  %v187_v4 = vmul.f32 0.6931472, %v297_v59 }
  0x30   :  { %v210_v33 = vmul.f32 %v293_v25, %v209_v29  ;;  %v224_v34 = vsub.f32 1.0, %v223_v31  ;;  %v196_v10 = vmul.f32 0.6931472, %v299_v0 }
  0x31   :  { %v193_v12 = vsel %vm192_vm12, %v190_v5, %v187_v4 }
  0x32   :  { %v211_v37 = vadd.f32 %v293_v25, %v210_v33  ;;  %v225_v38 = vmul.f32 %v295_v27, %v224_v34  ;;  %v202_v19 = vsel %vm201_vm13, %v199_v14, %v196_v10  ;;  %v203_v20 = vadd.f32 %v193_v12, %v183_v17 }
  0x33   :  { %v204_v22 = vadd.f32 %v202_v19, %v184_v18 }
  0x34   :  { %v215_v41 = vsel %vm214_vm6, %v293_v25, %v211_v37  ;;  %v226_v42 = vadd.f32 %v295_v27, %v225_v38 }
  0x35   :  { %v220_v44 = vsel %vm217_vm7, %v219_v36, %v215_v41 }
  0x36   :  { %v230_v46 = vsel %vm229_vm8, %v295_v27, %v226_v42  ;;  %v239_v47 = vmul.f32 %v434_v21, %v220_v44 }
  0x37   :  { %v235_v49 = vsel %vm232_vm9, %v234_v40, %v230_v46 }
  0x38   :  { %v240_v51 = vmul.f32 %v437_v23, %v235_v49  ;;  %v241_v52 = vsel %vm237_vm10, %v220_v44, %v239_v47 }
  0x39   :  { %v243_v54 = vsub.f32 %v241_v52, %v169_v45 }
  0x3a   :  { %v242_v55 = vsel %vm238_vm11, %v235_v49, %v240_v51 }
  0x3b   :  { %v244_v57 = vsub.f32 %v242_v55, %v170_v50  ;;  %v281_v58 = vadd.f32 -1.0, %v243_v54 }
  0x3d   :  { %v282_v62 = vadd.f32 -1.0, %v244_v57  ;;  %v247_v63 = vmul.f32 19.96008, %v281_v58 }
  0x3f   :  { %v248_v6 = vmul.f32 19.96008, %v282_v62  ;;  %v249_v7 = vmul.f32 1.442695, %v247_v63 }
  0x41   :  { %300 = vpow2.f32 %v249_v7  ;;  %v251_v16 = vmul.f32 1.442695, %v248_v6 }
  0x43   :  { %302 = vpow2.f32 %v251_v16 }
  0x47   :  { %v301_v21 = vpop.eup %300 }
  0x48   :  { %v253_v24 = vsub.f32 1.0, %v301_v21 }
  0x49   :  { %v303_v25 = vpop.eup %302 }
  0x4a   :  { %v254_v26 = vsub.f32 1.0, %v303_v25  ;;  %v255_v27 = vmul.f32 %v253_v24, %v203_v20 }
  0x4c   :  { %v256_v15 = vmul.f32 %v254_v26, %v204_v22  ;;  %v257_v28 = vsel %vm416_vm0, %v255_v27, 0.0 }
  0x4e   :  { %v258_v23 = vsel %vm424_vm1, %v256_v15, 0.0 }
  0x4f   :  { %v259_v29 = vadd.f32 %v258_v23, %v257_v28 }
  0x51   :  { %260 = vst [vmem:[#allocation9] sm:$0xff] %v259_v29 }
  0x52   :  { %271 = dma.vmem_to_hbm [thread:$0]  %s267_s2, 128, %s269_s27, [#allocation6]  }
  0x53   :  { %380 = dma.done.wait [#allocation6], 128  }
  0x54   :  { %381 = vsyncadd [#allocation6], 4294967168 }
  0x55   :  { %276 = vsyncpa [#allocation5], 1 }
  0x56   :  { %277 = vsyncpa [#allocation8], 1 }
  0x57   :  { %278 = vsyncpa [#allocation6], 1 }

</bundles_post_ra>
